<compile_context>
chip_gen: v7x
topology: tpu7x:2x2x1
jax: 0.10.0
libtpu: 0.0.40
codegen_flags: <defaults>
</compile_context>

<pallas_src>
import functools

import jax
import jax.numpy as jnp
from jax.experimental import pallas as pl
from jax.experimental.pallas import tpu as pltpu

_LANES = 128
_TILE_BYTES = 4 << 20       # combined (logits+targets) single-buffer tile budget
_MAX_BATCH_BLOCK = 512      # batch rows per block (multiple of 8); VMEM guard for huge N


def _soft_dice_kernel(x_ref, t_ref, inter_ref, sp_ref, st_ref, *, tail):
    """One (TN, TD) feature tile -> per-sample partial sums.

    x_ref, t_ref : (TN, TD) tiles of the flattened (N, D) logits / targets.
    *_ref outputs: (1, TN, 1) column `k` of the (KB, N, 1) partial-sum arrays.
    tail         : D % TD (static).  0 => every tile is full; otherwise only
                   the final feature tile is ragged and gets a lane mask.
    """
    x = x_ref[...].astype(jnp.float32)
    t = t_ref[...].astype(jnp.float32)

    def emit(probs, tgt):
        # Lane (XLU) reduction per tile is free next to the tile's HBM DMA.
        inter_ref[...] = jnp.sum(probs * tgt, axis=-1, keepdims=True)[None]
        sp_ref[...] = jnp.sum(probs, axis=-1, keepdims=True)[None]
        st_ref[...] = jnp.sum(tgt, axis=-1, keepdims=True)[None]

    if tail == 0:
        # Every tile is full: single unmasked path.
        emit(jax.nn.sigmoid(x), t)
    else:
        k = pl.program_id(1)
        last = pl.num_programs(1) - 1

        @pl.when(k != last)          # fast path: interior tiles, no masking VALU work
        def _():
            emit(jax.nn.sigmoid(x), t)

        @pl.when(k == last)          # ragged final tile: zero the invalid lanes
        def _():
            lane = jax.lax.broadcasted_iota(jnp.int32, x.shape, dimension=1)
            valid = lane < tail
            # jnp.where is a select, so stale/NaN garbage in the clipped DMA
            # region can never leak into the sums.
            emit(jnp.where(valid, jax.nn.sigmoid(x), 0.0),
                 jnp.where(valid, t, 0.0))


def soft_dice_loss(logits, targets):
    """Soft Dice loss (forward), matching the PyTorch SoftDiceLoss module.

    logits, targets: same shape (N, ...).  Any float dtype for logits; targets
    may be float32/bf16/int8/bool (binary masks as int8/bool stream 4x fewer
    bytes -- everything is cast to f32 inside the kernel).  Returns a scalar
    float32 loss.
    """
    assert logits.shape == targets.shape
    n = logits.shape[0]
    d = logits.size // n
    # Zero-copy flatten; ragged feature tails are handled inside the kernel.
    x2 = logits.reshape(n, d)
    t2 = targets.reshape(n, d)

    # ---- tile sizing (HBM-bound streaming kernel) --------------------------
    tn = n if n <= _MAX_BATCH_BLOCK else _MAX_BATCH_BLOCK
    itembytes = x2.dtype.itemsize + t2.dtype.itemsize
    if d <= _LANES:
        td = d                                        # block == full feature dim
    else:
        chunk_bytes = tn * _LANES * itembytes         # one 128-lane column slab
        chunks = max(1, _TILE_BYTES // chunk_bytes)
        td = min(chunks, d // _LANES) * _LANES        # multiple of 128, <= d

    nb = pl.cdiv(n, tn)
    kb = pl.cdiv(d, td)
    tail = d % td                                     # static ragged width

    in_spec = pl.BlockSpec((tn, td), lambda bi, k: (bi, k))
    out_spec = pl.BlockSpec((1, tn, 1), lambda bi, k: (k, bi, 0))
    out_struct = jax.ShapeDtypeStruct((kb, n, 1), jnp.float32)

    # Working set: 2 inputs x 2 pipeline buffers x <=4 MiB combined ~ 8 MiB,
    # comfortably under the default scoped-VMEM limit on v5e/v6e/v7x.
    inter_p, sp_p, st_p = pl.pallas_call(
        functools.partial(_soft_dice_kernel, tail=tail),
        out_shape=(out_struct, out_struct, out_struct),
        grid=(nb, kb),
        in_specs=[in_spec, in_spec],
        out_specs=(out_spec, out_spec, out_spec),
        compiler_params=pltpu.CompilerParams(
            # Each grid step writes its own output block (no carried
            # accumulator), so both axes are truly parallel; on single-TC
            # v5e/v6e this is just a serial loop with zero extra overhead.
            dimension_semantics=("parallel", "parallel"),
        ),
    )(x2, t2)

    # Tiny scalar epilogue in plain JAX: combine the per-tile partial sums.
    inter = jnp.sum(inter_p, axis=(0, 2))            # (N,)
    sum_p = jnp.sum(sp_p, axis=(0, 2))
    sum_t = jnp.sum(st_p, axis=(0, 2))
    smooth = 1.0
    score = 2.0 * (inter + smooth) / (sum_p + sum_t + smooth)
    return 1.0 - jnp.sum(score) / n


def _reference(logits, targets):
    n = logits.shape[0]
    smooth = 1.0
    probs = jax.nn.sigmoid(logits.astype(jnp.float32))
    m1 = probs.reshape(n, -1)
    m2 = targets.astype(jnp.float32).reshape(n, -1)
    inter = (m1 * m2).sum(1)
    score = 2.0 * (inter + smooth) / (m1.sum(1) + m2.sum(1) + smooth)
    return 1.0 - score.sum() / n


if __name__ == "__main__":
    key = jax.random.PRNGKey(0)
    k1, k2, k3, k4 = jax.random.split(key, 4)

    # Case 1: nominal small shape (D = 1024, 128-aligned), float32.
    N, C, H, W = 2, 4, 16, 16
    logits = jax.random.normal(k1, (N, C, H, W), dtype=jnp.float32)
    targets = jax.random.bernoulli(k2, 0.5, (N, C, H, W)).astype(jnp.float32)
    loss = jax.block_until_ready(jax.jit(soft_dice_loss)(logits, targets))
    ref = _reference(logits, targets)
    assert jnp.allclose(loss, ref, atol=1e-5, rtol=1e-5), (loss, ref)

    # Case 2: ragged feature size (D = 675, not a multiple of 128) + bf16
    # (exercises the in-kernel lane-mask path and the narrow-dtype path).
    N2, C2, H2, W2 = 2, 3, 15, 15
    logits_b = jax.random.normal(k3, (N2, C2, H2, W2), dtype=jnp.bfloat16)
    targets_b = jax.random.bernoulli(k4, 0.5, (N2, C2, H2, W2)).astype(jnp.bfloat16)
    loss_b = jax.block_until_ready(jax.jit(soft_dice_loss)(logits_b, targets_b))
    ref_b = _reference(logits_b, targets_b)
    assert jnp.allclose(loss_b, ref_b, atol=1e-4, rtol=1e-4), (loss_b, ref_b)

    print("KERNEL_OK")
</pallas_src>

<mosaic_0001>
module attributes {stable_mosaic.version = 11 : i64} {
  func.func @_soft_dice_kernel(%arg0: i32, %arg1: i32, %arg2: memref<2x1024xf32, #tpu.memory_space<vmem>>, %arg3: memref<2x1024xf32, #tpu.memory_space<vmem>>, %arg4: memref<1x2x1xf32, #tpu.memory_space<vmem>>, %arg5: memref<1x2x1xf32, #tpu.memory_space<vmem>>, %arg6: memref<1x2x1xf32, #tpu.memory_space<vmem>>) attributes {dimension_semantics = [#tpu.dimension_semantics<parallel>, #tpu.dimension_semantics<parallel>], iteration_bounds = array<i64: 1, 1>, scalar_prefetch = 0 : i64, scratch_operands = 0 : i64, tpu.core_type = #tpu.core_type<tc>, window_params = [{transform_indices = @transform_0, window_bounds = array<i64: 2, 1024>}, {transform_indices = @transform_1, window_bounds = array<i64: 2, 1024>}, {transform_indices = @transform_2, window_bounds = array<i64: 1, 2, 1>}, {transform_indices = @transform_3, window_bounds = array<i64: 1, 2, 1>}, {transform_indices = @transform_4, window_bounds = array<i64: 1, 2, 1>}]} {
    %c0 = arith.constant 0 : index
    %c0_0 = arith.constant 0 : index
    %0 = vector.load %arg2[%c0, %c0_0] : memref<2x1024xf32, #tpu.memory_space<vmem>>, vector<2x1024xf32>
    %c0_1 = arith.constant 0 : index
    %c0_2 = arith.constant 0 : index
    %1 = vector.load %arg3[%c0_1, %c0_2] : memref<2x1024xf32, #tpu.memory_space<vmem>>, vector<2x1024xf32>
    %2 = arith.negf %0 : vector<2x1024xf32>
    %3 = math.exp %2 : vector<2x1024xf32>
    %cst = arith.constant 1.000000e+00 : f32
    %4 = vector.broadcast %cst : f32 to vector<2x1024xf32>
    %5 = arith.addf %4, %3 : vector<2x1024xf32>
    %6 = arith.divf %4, %5 : vector<2x1024xf32>
    %7 = arith.mulf %6, %1 : vector<2x1024xf32>
    %cst_3 = arith.constant dense<0.000000e+00> : vector<2xf32>
    %8 = vector.multi_reduction <add>, %7, %cst_3 [1] : vector<2x1024xf32> to vector<2xf32>
    %9 = vector.shape_cast %8 : vector<2xf32> to vector<2x1xf32>
    %10 = vector.shape_cast %9 : vector<2x1xf32> to vector<1x2x1xf32>
    %c0_4 = arith.constant 0 : index
    %c0_5 = arith.constant 0 : index
    %c0_6 = arith.constant 0 : index
    %11 = vector.load %arg4[%c0_4, %c0_5, %c0_6] : memref<1x2x1xf32, #tpu.memory_space<vmem>>, vector<1x2x1xf32>
    tpu.vector_store %arg4[%c0_4, %c0_5, %c0_6], %10 {strides = array<i32>} : memref<1x2x1xf32, #tpu.memory_space<vmem>>, vector<1x2x1xf32>,
    %cst_7 = arith.constant dense<0.000000e+00> : vector<2xf32>
    %12 = vector.multi_reduction <add>, %6, %cst_7 [1] : vector<2x1024xf32> to vector<2xf32>
    %13 = vector.shape_cast %12 : vector<2xf32> to vector<2x1xf32>
    %14 = vector.shape_cast %13 : vector<2x1xf32> to vector<1x2x1xf32>
    %c0_8 = arith.constant 0 : index
    %c0_9 = arith.constant 0 : index
    %c0_10 = arith.constant 0 : index
    %15 = vector.load %arg5[%c0_8, %c0_9, %c0_10] : memref<1x2x1xf32, #tpu.memory_space<vmem>>, vector<1x2x1xf32>
    tpu.vector_store %arg5[%c0_8, %c0_9, %c0_10], %14 {strides = array<i32>} : memref<1x2x1xf32, #tpu.memory_space<vmem>>, vector<1x2x1xf32>,
    %cst_11 = arith.constant dense<0.000000e+00> : vector<2xf32>
    %16 = vector.multi_reduction <add>, %1, %cst_11 [1] : vector<2x1024xf32> to vector<2xf32>
    %17 = vector.shape_cast %16 : vector<2xf32> to vector<2x1xf32>
    %18 = vector.shape_cast %17 : vector<2x1xf32> to vector<1x2x1xf32>
    %c0_12 = arith.constant 0 : index
    %c0_13 = arith.constant 0 : index
    %c0_14 = arith.constant 0 : index
    %19 = vector.load %arg6[%c0_12, %c0_13, %c0_14] : memref<1x2x1xf32, #tpu.memory_space<vmem>>, vector<1x2x1xf32>
    tpu.vector_store %arg6[%c0_12, %c0_13, %c0_14], %18 {strides = array<i32>} : memref<1x2x1xf32, #tpu.memory_space<vmem>>, vector<1x2x1xf32>,
    return
  }
  func.func @transform_0(%arg0: i32, %arg1: i32) -> (i32, i32) {
    %c0_i32 = arith.constant 0 : i32
    return %arg0, %arg1 : i32, i32
  }
  func.func @transform_1(%arg0: i32, %arg1: i32) -> (i32, i32) {
    %c0_i32 = arith.constant 0 : i32
    return %arg0, %arg1 : i32, i32
  }
  func.func @transform_2(%arg0: i32, %arg1: i32) -> (i32, i32, i32) {
    %c0_i32 = arith.constant 0 : i32
    %c0_i32_0 = arith.constant 0 : i32
    return %arg1, %arg0, %c0_i32 : i32, i32, i32
  }
  func.func @transform_3(%arg0: i32, %arg1: i32) -> (i32, i32, i32) {
    %c0_i32 = arith.constant 0 : i32
    %c0_i32_0 = arith.constant 0 : i32
    return %arg1, %arg0, %c0_i32 : i32, i32, i32
  }
  func.func @transform_4(%arg0: i32, %arg1: i32) -> (i32, i32, i32) {
    %c0_i32 = arith.constant 0 : i32
    %c0_i32_0 = arith.constant 0 : i32
    return %arg1, %arg0, %c0_i32 : i32, i32, i32
  }
}

</mosaic_0001>

<bundles_post_ra>
// kernel: soft_dice_loss.1
= control target key start
LH: loop header
LB: loop body
LE: loop exit
PB: predicated region body
PF: predicated region fallthrough
CT: control target
= control target key end

     0   :  { %v38_v0 = vlaneseq  ;;  %v245_v3 = vmov 1983009808   ;;  %vm76_vm0 = vcmask 1041408   ;;  %vm94_vm1 = vcmask 1024   ;;  %s330_s0 = inlined_call_operand.vmem [shape: f32[2,1024], index: 0, kind: input, shape index: {}]   ;;  %s331_s1 = inlined_call_operand.vmem [shape: f32[2,1024], index: 1, kind: input, shape index: {}]   ;;  %s332_s4 = inlined_call_operand.vmem [shape: f32[1,2,1], index: 4, kind: output, shape index: {2}]   ;;  %s333_s2 = inlined_call_operand.vmem [shape: f32[1,2,1], index: 2, kind: output, shape index: {0}]   ;;  %s334_s3 = inlined_call_operand.vmem [shape: f32[1,2,1], index: 3, kind: output, shape index: {1}]  }
   0x1   :  { %v14_v1 = vld [vmem:[%s330_s0] sm:$0xff]  ;;  %v15_v2 = vld [vmem:[%s330_s0 + $0x8] sm:$0xff]  ;;  %v36_v4 = vunpack.c.l.s4 %v245_v3 }
   0x2   :  { %v16_v5 = vld [vmem:[%s331_s1] sm:$0xff]  ;;  %v232_v6 = vmul.f32 -1.442695, %v14_v1  ;;  %v233_v7 = vmul.f32 -1.442695, %v15_v2  ;;  %v39_v8 = vshrl.u32 %v38_v0, 7 }
   0x3   :  { %v37_v9 = vunpack.c.0.s8 %v36_v4  ;;  %v160_v10 = vcombine.high %v16_v5, %v16_v5  ;;  %v17_v14 = vld [vmem:[%s331_s1 + $0x8] sm:$0xff] }
   0x4   :  { %237 = vpow2.f32 %v232_v6  ;;  %v177_v17 = vcombine.high %v17_v14, %v17_v14 }
   0x5   :  { %239 = vpow2.f32 %v233_v7  ;;  %v280_v11 = vsub.s32 %v37_v9, %v39_v8 }
   0x7   :  { %v167_v12 = vrot.slane %v16_v5, %v280_v11  ;;  %v174_v13 = vrot.slane %v160_v10, %v280_v11  ;;  %v184_v18 = vrot.slane %v17_v14, %v280_v11  ;;  %v191_v23 = vrot.slane %v177_v17, %v280_v11 }
   0x9   :  { %v175_v15 = vcombine.high %v167_v12, %v167_v12  ;;  %v176_v16 = vcombine.high %v174_v13, %v174_v13  ;;  %v202_v19 = vsel %vm76_vm0, %v167_v12, 0.0  ;;  %v205_v21 = vsel %vm76_vm0, %v174_v13, 0.0 }
   0xa   :  { %v192_v24 = vcombine.high %v184_v18, %v184_v18  ;;  %v209_v30 = vsel %vm76_vm0, %v184_v18, 0.0  ;;  %v193_v33 = vcombine.high %v191_v23, %v191_v23  ;;  %v213_v36 = vsel %vm76_vm0, %v191_v23, 0.0 }
   0xb   :  { %v203_v20 = vsel %vm76_vm0, %v175_v15, 0.0  ;;  %v207_v25 = vsel %vm76_vm0, %v176_v16, 0.0 }
   0xc   :  { %v204_v22 = vadd.f32 %v203_v20, %v202_v19  ;;  %v211_v34 = vsel %vm76_vm0, %v192_v24, 0.0  ;;  %v215_v38 = vsel %vm76_vm0, %v193_v33, 0.0 }
   0xe   :  { %v238_v26 = vpop.eup %237  ;;  %v206_v27 = vadd.f32 %v205_v21, %v204_v22 }
   0xf   :  { %v240_v28 = vpop.eup %239  ;;  %v24_v29 = vadd.f32 1.0, %v238_v26 }
  0x10   :  { %v25_v31 = vadd.f32 1.0, %v240_v28  ;;  %v208_v32 = vadd.f32 %v207_v25, %v206_v27 }
  0x11   :  { %241 = vrcp.f32 %v24_v29 }
  0x12   :  { %243 = vrcp.f32 %v25_v31  ;;  %v210_v35 = vadd.f32 %v209_v30, %v208_v32 }
  0x14   :  { %v212_v37 = vadd.f32 %v211_v34, %v210_v35 }
  0x16   :  { %v214_v39 = vadd.f32 %v213_v36, %v212_v37 }
  0x18   :  { %v216_v40 = vadd.f32 %v215_v38, %v214_v39 }
  0x1a   :  { %217 = vadd.xlane.f32.xlu1 %v216_v40 }
  0x1b   :  { %v242_v41 = vpop.eup %241 }
  0x1c   :  { %v244_v42 = vpop.eup %243  ;;  %v30_v43 = vmul.f32 %v242_v41, %v16_v5  ;;  %v98_v44 = vcombine.high %v242_v41, %v242_v41  ;;  %v105_v45 = vrot.slane %v242_v41, %v280_v11 }
  0x1d   :  { %v31_v46 = vmul.f32 %v244_v42, %v17_v14  ;;  %v115_v57 = vcombine.high %v244_v42, %v244_v42  ;;  %v122_v58 = vrot.slane %v244_v42, %v280_v11 }
  0x1e   :  { %v34_v47 = vcombine.high %v30_v43, %v30_v43  ;;  %v41_v48 = vrot.slane %v30_v43, %v280_v11  ;;  %v112_v49 = vrot.slane %v98_v44, %v280_v11  ;;  %v113_v51 = vcombine.high %v105_v45, %v105_v45 }
  0x1f   :  { %v51_v50 = vcombine.high %v31_v46, %v31_v46  ;;  %v58_v54 = vrot.slane %v31_v46, %v280_v11  ;;  %v140_v62 = vsel %vm76_vm0, %v105_v45, 0.0  ;;  %v129_v8 = vrot.slane %v115_v57, %v280_v11 }
  0x20   :  { %v48_v52 = vrot.slane %v34_v47, %v280_v11  ;;  %v49_v53 = vcombine.high %v41_v48, %v41_v48  ;;  %v77_v55 = vsel %vm76_vm0, %v41_v48, 0.0  ;;  %v114_v56 = vcombine.high %v112_v49, %v112_v49 }
  0x21   :  { %v65_v63 = vrot.slane %v51_v50, %v280_v11  ;;  %v66_v1 = vcombine.high %v58_v54, %v58_v54  ;;  %v141_v3 = vsel %vm76_vm0, %v113_v51, 0.0  ;;  %v143_v4 = vsel %vm76_vm0, %v112_v49, 0.0 }
  0x22   :  { %v50_v59 = vcombine.high %v48_v52, %v48_v52  ;;  %v78_v60 = vsel %vm76_vm0, %v49_v53, 0.0  ;;  %v80_v61 = vsel %vm76_vm0, %v48_v52, 0.0  ;;  %v142_v6 = vadd.f32 %v141_v3, %v140_v62 }
  0x23   :  { %v79_v0 = vadd.f32 %v78_v60, %v77_v55  ;;  %v84_v7 = vsel %vm76_vm0, %v58_v54, 0.0  ;;  %v130_v9 = vcombine.high %v122_v58, %v122_v58  ;;  %v145_v10 = vsel %vm76_vm0, %v114_v56, 0.0 }
  0x24   :  { %v82_v2 = vsel %vm76_vm0, %v50_v59, 0.0  ;;  %v144_v13 = vadd.f32 %v143_v4, %v142_v6  ;;  %v67_v14 = vcombine.high %v65_v63, %v65_v63  ;;  %v86_v15 = vsel %vm76_vm0, %v66_v1, 0.0 }
  0x25   :  { %v81_v5 = vadd.f32 %v80_v61, %v79_v0  ;;  %v147_v16 = vsel %vm76_vm0, %v122_v58, 0.0  ;;  %v88_v19 = vsel %vm76_vm0, %v65_v63, 0.0  ;;  %v131_v20 = vcombine.high %v129_v8, %v129_v8 }
  0x26   :  { %v146_v18 = vadd.f32 %v145_v10, %v144_v13  ;;  %v149_v21 = vsel %vm76_vm0, %v130_v9, 0.0  ;;  %v90_v11 = vsel %vm76_vm0, %v67_v14, 0.0  ;;  %v151_v24 = vsel %vm76_vm0, %v129_v8, 0.0 }
  0x27   :  { %v83_v12 = vadd.f32 %v82_v2, %v81_v5  ;;  %v153_v27 = vsel %vm76_vm0, %v131_v20, 0.0 }
  0x28   :  { %v148_v23 = vadd.f32 %v147_v16, %v146_v18 }
  0x29   :  { %v85_v17 = vadd.f32 %v84_v7, %v83_v12 }
  0x2a   :  { %v150_v26 = vadd.f32 %v149_v21, %v148_v23 }
  0x2b   :  { %v87_v22 = vadd.f32 %v86_v15, %v85_v17 }
  0x2c   :  { %v152_v29 = vadd.f32 %v151_v24, %v150_v26 }
  0x2d   :  { %v89_v25 = vadd.f32 %v88_v19, %v87_v22 }
  0x2e   :  { %v154_v30 = vadd.f32 %v153_v27, %v152_v29 }
  0x2f   :  { %v91_v28 = vadd.f32 %v90_v11, %v89_v25 }
  0x31   :  { %92 = vadd.xlane.f32.xlu0 %v91_v28 }
  0x35   :  { %155 = vadd.xlane.f32.xlu0 %v154_v30 }
  0xa7   :  { %v218_v31 = vpop.xlane.xlu1 %217 }
  0xa8   :  { %219 = vst.msk [vmem:[%s332_s4] sm:$0x3] %vm94_vm1, %v218_v31 }
  0xbe   :  { %v93_v32 = vpop.xlane.xlu0 %92 }
  0xbf   :  { %95 = vst.msk [vmem:[%s333_s2] sm:$0x3] %vm94_vm1, %v93_v32 }
  0xc2   :  { %v156_v33 = vpop.xlane.xlu0 %155 }
  0xc3   :  { %157 = vst.msk [vmem:[%s334_s3] sm:$0x3] %vm94_vm1, %v156_v33 }

</bundles_post_ra>
